<compile_context>
chip_gen: v7x
topology: tpu7x:2x2x1
jax: 0.10.0
libtpu: 0.0.40
codegen_flags: <defaults>
</compile_context>

<pallas_src>
import jax
import jax.numpy as jnp
from jax import lax
from jax.experimental import pallas as pl
from jax.experimental.pallas import tpu as pltpu

EPS = 1e-5
KSIZE = 3


def make_resblock_kernel(Cp, H, W):
    HW = H * W
    inv_hw = 1.0 / HW

    def kernel(x_ref, aux_ref, w1_ref, w2_ref, o_ref):
        # x_ref  : (1, Cp, HW) VMEM  input sample, channels-major, lane-dense
        # aux_ref: (2, HW)     VMEM  int32 [column index w ; row index h]
        # w*_ref : (9, Cp, Cp) VMEM  weight tap k = ky*3+kx is w[:, :, ky, kx]
        # o_ref  : (1, Cp, HW) VMEM  output sample
        x = x_ref[0]                                     # (Cp, HW)

        col = aux_ref[0:1, :]                            # (1, HW)
        row = aux_ref[1:2, :]                            # (1, HW)
        # Hoisted mask broadcasts (JAX does not CSE broadcast_in_dim).
        first_col = jnp.broadcast_to(col == 0, (Cp, HW))
        last_col = jnp.broadcast_to(col == (W - 1), (Cp, HW))
        first_row = jnp.broadcast_to(row == 0, (Cp, HW))
        last_row = jnp.broadcast_to(row == (H - 1), (Cp, HW))

        def conv3x3_reflect(y, w_ref):
            # 3x3 conv with reflect padding, no patch materialization:
            # taps are lane-rolls of the slab + boundary reflect-selects,
            # contraction is 9 accumulated (Cp,Cp)@(Cp,HW) MXU matmuls.
            dn = pltpu.roll(y, W, axis=1)        # row h-1 (wraps at h == 0)
            up = pltpu.roll(y, HW - W, axis=1)   # row h+1 (wraps at h == H-1)
            v_rows = (
                jnp.where(first_row, up, dn),    # ky=0: reflect -> row 1 at h==0
                y,                               # ky=1: center row (no copy)
                jnp.where(last_row, dn, up),     # ky=2: reflect -> row H-2 at h==H-1
            )
            acc = jnp.zeros((Cp, HW), jnp.float32)
            for ky in range(KSIZE):
                v = v_rows[ky]
                lf = pltpu.roll(v, 1, axis=1)       # col w-1 (garbage at w==0, masked)
                rt = pltpu.roll(v, HW - 1, axis=1)  # col w+1 (garbage at w==W-1, masked)
                taps = (
                    jnp.where(first_col, rt, lf),   # kx=0: reflect -> col 1 at w==0
                    v,                              # kx=1: center tap (no copy)
                    jnp.where(last_col, lf, rt),    # kx=2: reflect -> col W-2 at w==W-1
                )
                for kx in range(KSIZE):
                    acc = acc + jnp.dot(w_ref[ky * KSIZE + kx], taps[kx],
                                        preferred_element_type=jnp.float32)
            return acc

        def instance_norm(y):
            # InstanceNorm2d(affine=False): two-pass mean / centered variance
            # (avoids E[x^2]-E[x]^2 cancellation), eps inside rsqrt (EUP).
            mean = jnp.sum(y, axis=1, keepdims=True) * inv_hw
            d = y - mean
            var = jnp.sum(d * d, axis=1, keepdims=True) * inv_hw
            return d * lax.rsqrt(var + EPS)

        # ---- ConvBlock 1: conv3x3 (reflect) -> InstanceNorm -> ReLU ----
        y1 = jnp.maximum(instance_norm(conv3x3_reflect(x, w1_ref)), 0.0)
        # ---- ConvBlock 2: conv3x3 (reflect) -> InstanceNorm; residual add ----
        y2 = instance_norm(conv3x3_reflect(y1, w2_ref))
        o_ref[0] = x + y2

    return kernel


def resblock_pallas(x, w1, b1, w2, b2):
    # b1/b2 are accepted for parity with the PyTorch module but are unused:
    # InstanceNorm2d(affine=False) subtracts the per-channel mean, so the
    # per-channel conv bias cancels exactly (documented coupling).
    del b1, b2
    N, C, H, W = x.shape
    HW = H * W
    Cp = ((C + 7) // 8) * 8  # pad channels to a sublane multiple (unmasked stores)

    x_flat = x.reshape(N, C, HW)
    if Cp != C:
        x_flat = jnp.pad(x_flat, ((0, 0), (0, Cp - C), (0, 0)))

    def pack_w(w):
        # (O, I, KH, KW) -> (KH, KW, O, I) -> (9, C, C); tap k = ky*3 + kx.
        wt = jnp.transpose(w, (2, 3, 0, 1)).reshape(KSIZE * KSIZE, C, C)
        if Cp != C:
            wt = jnp.pad(wt, ((0, 0), (0, Cp - C), (0, Cp - C)))
        return wt

    w1p = pack_w(w1)
    w2p = pack_w(w2)

    # Single tiny (2, HW) int32 index row: [w index ; h index] per pixel.
    aux = jnp.stack([
        jnp.tile(jnp.arange(W, dtype=jnp.int32), H),
        jnp.repeat(jnp.arange(H, dtype=jnp.int32), W),
    ])

    kernel = make_resblock_kernel(Cp, H, W)
    out_flat = pl.pallas_call(
        kernel,
        out_shape=jax.ShapeDtypeStruct((N, Cp, HW), jnp.float32),
        grid_spec=pltpu.PrefetchScalarGridSpec(
            num_scalar_prefetch=0,
            grid=(N,),
            in_specs=[
                pl.BlockSpec((1, Cp, HW), lambda n: (n, 0, 0)),
                pl.BlockSpec((2, HW), lambda n: (0, 0)),
                pl.BlockSpec((KSIZE * KSIZE, Cp, Cp), lambda n: (0, 0, 0)),
                pl.BlockSpec((KSIZE * KSIZE, Cp, Cp), lambda n: (0, 0, 0)),
            ],
            out_specs=pl.BlockSpec((1, Cp, HW), lambda n: (n, 0, 0)),
        ),
        compiler_params=pltpu.CompilerParams(
            dimension_semantics=("parallel",),
            vmem_limit_bytes=32 * 1024 * 1024),
    )(x_flat, aux, w1p, w2p)
    return out_flat[:, :C, :].reshape(N, C, H, W)


def resblock_reference(x, w1, b1, w2, b2):
    # Pure-JAX reference matching the PyTorch module semantics.
    def conv_block(inp, w, b, relu):
        xp = jnp.pad(inp, ((0, 0), (0, 0), (1, 1), (1, 1)), mode='reflect')
        y = lax.conv_general_dilated(
            xp, w, window_strides=(1, 1), padding='VALID',
            dimension_numbers=('NCHW', 'OIHW', 'NCHW'))
        y = y + b[None, :, None, None]
        m = jnp.mean(y, axis=(2, 3), keepdims=True)
        v = jnp.mean((y - m) ** 2, axis=(2, 3), keepdims=True)
        y = (y - m) / jnp.sqrt(v + EPS)
        if relu:
            y = jnp.maximum(y, 0.0)
        return y

    y = conv_block(x, w1, b1, True)
    y = conv_block(y, w2, b2, False)
    return x + y


if __name__ == "__main__":
    N, C, H, W = 2, 4, 16, 16

    key = jax.random.PRNGKey(0)
    kx, kw1, kb1, kw2, kb2 = jax.random.split(key, 5)

    x = jax.random.normal(kx, (N, C, H, W), dtype=jnp.float32)
    # Synthetic parameters matching nn.Conv2d(C, C, 3) shapes.
    w1 = 0.2 * jax.random.normal(kw1, (C, C, KSIZE, KSIZE), dtype=jnp.float32)
    b1 = 0.1 * jax.random.normal(kb1, (C,), dtype=jnp.float32)
    w2 = 0.2 * jax.random.normal(kw2, (C, C, KSIZE, KSIZE), dtype=jnp.float32)
    b2 = 0.1 * jax.random.normal(kb2, (C,), dtype=jnp.float32)

    out = resblock_pallas(x, w1, b1, w2, b2)
    out = jax.block_until_ready(out)

    ref = resblock_reference(x, w1, b1, w2, b2)
    assert out.shape == (N, C, H, W)
    assert jnp.allclose(out, ref, atol=1e-3, rtol=1e-3), "mismatch vs reference"

    print("KERNEL_OK")
</pallas_src>

<mosaic_0001>
module attributes {stable_mosaic.version = 11 : i64} {
  func.func @kernel(%arg0: i32, %arg1: memref<1x8x256xf32, #tpu.memory_space<vmem>>, %arg2: memref<2x256xi32, #tpu.memory_space<vmem>>, %arg3: memref<9x8x8xf32, #tpu.memory_space<vmem>>, %arg4: memref<9x8x8xf32, #tpu.memory_space<vmem>>, %arg5: memref<1x8x256xf32, #tpu.memory_space<vmem>>) attributes {dimension_semantics = [#tpu.dimension_semantics<parallel>], iteration_bounds = array<i64: 2>, scalar_prefetch = 0 : i64, scratch_operands = 0 : i64, tpu.core_type = #tpu.core_type<tc>, window_params = [{transform_indices = @transform_0, window_bounds = array<i64: 1, 8, 256>}, {pipeline_mode = #tpu.pipeline_mode<synchronous>, transform_indices = @transform_1, window_bounds = array<i64: 2, 256>}, {pipeline_mode = #tpu.pipeline_mode<synchronous>, transform_indices = @transform_2, window_bounds = array<i64: 9, 8, 8>}, {pipeline_mode = #tpu.pipeline_mode<synchronous>, transform_indices = @transform_3, window_bounds = array<i64: 9, 8, 8>}, {transform_indices = @transform_4, window_bounds = array<i64: 1, 8, 256>}]} {
    %c0 = arith.constant 0 : index
    %c0_0 = arith.constant 0 : index
    %c0_1 = arith.constant 0 : index
    %0 = vector.load %arg1[%c0, %c0_0, %c0_1] : memref<1x8x256xf32, #tpu.memory_space<vmem>>, vector<1x8x256xf32>
    %1 = vector.shape_cast %0 : vector<1x8x256xf32> to vector<8x256xf32>
    %c0_2 = arith.constant 0 : index
    %c0_3 = arith.constant 0 : index
    %2 = vector.load %arg2[%c0_2, %c0_3] : memref<2x256xi32, #tpu.memory_space<vmem>>, vector<1x256xi32>
    %c1 = arith.constant 1 : index
    %c0_4 = arith.constant 0 : index
    %3 = vector.load %arg2[%c1, %c0_4] : memref<2x256xi32, #tpu.memory_space<vmem>>, vector<1x256xi32>
    %c0_i32 = arith.constant 0 : i32
    %4 = vector.broadcast %c0_i32 : i32 to vector<1x256xi32>
    %5 = arith.cmpi eq, %2, %4 : vector<1x256xi32>
    %6 = vector.shape_cast %5 : vector<1x256xi1> to vector<1x256xi1>
    %7 = vector.broadcast %6 : vector<1x256xi1> to vector<8x256xi1>
    %c15_i32 = arith.constant 15 : i32
    %8 = vector.broadcast %c15_i32 : i32 to vector<1x256xi32>
    %9 = arith.cmpi eq, %2, %8 : vector<1x256xi32>
    %10 = vector.shape_cast %9 : vector<1x256xi1> to vector<1x256xi1>
    %11 = vector.broadcast %10 : vector<1x256xi1> to vector<8x256xi1>
    %c0_i32_5 = arith.constant 0 : i32
    %12 = vector.broadcast %c0_i32_5 : i32 to vector<1x256xi32>
    %13 = arith.cmpi eq, %3, %12 : vector<1x256xi32>
    %14 = vector.shape_cast %13 : vector<1x256xi1> to vector<1x256xi1>
    %15 = vector.broadcast %14 : vector<1x256xi1> to vector<8x256xi1>
    %c15_i32_6 = arith.constant 15 : i32
    %16 = vector.broadcast %c15_i32_6 : i32 to vector<1x256xi32>
    %17 = arith.cmpi eq, %3, %16 : vector<1x256xi32>
    %18 = vector.shape_cast %17 : vector<1x256xi1> to vector<1x256xi1>
    %19 = vector.broadcast %18 : vector<1x256xi1> to vector<8x256xi1>
    %c16_i32 = arith.constant 16 : i32
    %20 = tpu.dynamic_rotate %1 by %c16_i32 dim 1 : vector<8x256xf32>, i32 -> vector<8x256xf32>
    %c240_i32 = arith.constant 240 : i32
    %21 = tpu.dynamic_rotate %1 by %c240_i32 dim 1 : vector<8x256xf32>, i32 -> vector<8x256xf32>
    %22 = arith.select %15, %21, %20 : vector<8x256xi1>, vector<8x256xf32>
    %23 = arith.select %19, %20, %21 : vector<8x256xi1>, vector<8x256xf32>
    %cst = arith.constant 0.000000e+00 : f32
    %24 = vector.broadcast %cst : f32 to vector<8x256xf32>
    %c1_i32 = arith.constant 1 : i32
    %25 = tpu.dynamic_rotate %22 by %c1_i32 dim 1 : vector<8x256xf32>, i32 -> vector<8x256xf32>
    %c255_i32 = arith.constant 255 : i32
    %26 = tpu.dynamic_rotate %22 by %c255_i32 dim 1 : vector<8x256xf32>, i32 -> vector<8x256xf32>
    %27 = arith.select %7, %26, %25 : vector<8x256xi1>, vector<8x256xf32>
    %28 = arith.select %11, %25, %26 : vector<8x256xi1>, vector<8x256xf32>
    %c0_7 = arith.constant 0 : index
    %c0_8 = arith.constant 0 : index
    %c0_9 = arith.constant 0 : index
    %29 = vector.load %arg3[%c0_7, %c0_8, %c0_9] : memref<9x8x8xf32, #tpu.memory_space<vmem>>, vector<1x8x8xf32>
    %30 = vector.shape_cast %29 : vector<1x8x8xf32> to vector<8x8xf32>
    %cst_10 = arith.constant dense<0.000000e+00> : vector<8x256xf32>
    %31 = tpu.matmul %30, %27, %cst_10 {dimension_numbers = #tpu.dot_dimension_numbers<[1], [0], [0], [1], [0, 0, 1, 1], [], []>} : vector<8x8xf32>, vector<8x256xf32>, vector<8x256xf32> -> vector<8x256xf32>
    %32 = arith.addf %24, %31 : vector<8x256xf32>
    %c1_11 = arith.constant 1 : index
    %c0_12 = arith.constant 0 : index
    %c0_13 = arith.constant 0 : index
    %33 = vector.load %arg3[%c1_11, %c0_12, %c0_13] : memref<9x8x8xf32, #tpu.memory_space<vmem>>, vector<1x8x8xf32>
    %34 = vector.shape_cast %33 : vector<1x8x8xf32> to vector<8x8xf32>
    %cst_14 = arith.constant dense<0.000000e+00> : vector<8x256xf32>
    %35 = tpu.matmul %34, %22, %cst_14 {dimension_numbers = #tpu.dot_dimension_numbers<[1], [0], [0], [1], [0, 0, 1, 1], [], []>} : vector<8x8xf32>, vector<8x256xf32>, vector<8x256xf32> -> vector<8x256xf32>
    %36 = arith.addf %32, %35 : vector<8x256xf32>
    %c2 = arith.constant 2 : index
    %c0_15 = arith.constant 0 : index
    %c0_16 = arith.constant 0 : index
    %37 = vector.load %arg3[%c2, %c0_15, %c0_16] : memref<9x8x8xf32, #tpu.memory_space<vmem>>, vector<1x8x8xf32>
    %38 = vector.shape_cast %37 : vector<1x8x8xf32> to vector<8x8xf32>
    %cst_17 = arith.constant dense<0.000000e+00> : vector<8x256xf32>
    %39 = tpu.matmul %38, %28, %cst_17 {dimension_numbers = #tpu.dot_dimension_numbers<[1], [0], [0], [1], [0, 0, 1, 1], [], []>} : vector<8x8xf32>, vector<8x256xf32>, vector<8x256xf32> -> vector<8x256xf32>
    %40 = arith.addf %36, %39 : vector<8x256xf32>
    %c1_i32_18 = arith.constant 1 : i32
    %41 = tpu.dynamic_rotate %1 by %c1_i32_18 dim 1 : vector<8x256xf32>, i32 -> vector<8x256xf32>
    %c255_i32_19 = arith.constant 255 : i32
    %42 = tpu.dynamic_rotate %1 by %c255_i32_19 dim 1 : vector<8x256xf32>, i32 -> vector<8x256xf32>
    %43 = arith.select %7, %42, %41 : vector<8x256xi1>, vector<8x256xf32>
    %44 = arith.select %11, %41, %42 : vector<8x256xi1>, vector<8x256xf32>
    %c3 = arith.constant 3 : index
    %c0_20 = arith.constant 0 : index
    %c0_21 = arith.constant 0 : index
    %45 = vector.load %arg3[%c3, %c0_20, %c0_21] : memref<9x8x8xf32, #tpu.memory_space<vmem>>, vector<1x8x8xf32>
    %46 = vector.shape_cast %45 : vector<1x8x8xf32> to vector<8x8xf32>
    %cst_22 = arith.constant dense<0.000000e+00> : vector<8x256xf32>
    %47 = tpu.matmul %46, %43, %cst_22 {dimension_numbers = #tpu.dot_dimension_numbers<[1], [0], [0], [1], [0, 0, 1, 1], [], []>} : vector<8x8xf32>, vector<8x256xf32>, vector<8x256xf32> -> vector<8x256xf32>
    %48 = arith.addf %40, %47 : vector<8x256xf32>
    %c4 = arith.constant 4 : index
    %c0_23 = arith.constant 0 : index
    %c0_24 = arith.constant 0 : index
    %49 = vector.load %arg3[%c4, %c0_23, %c0_24] : memref<9x8x8xf32, #tpu.memory_space<vmem>>, vector<1x8x8xf32>
    %50 = vector.shape_cast %49 : vector<1x8x8xf32> to vector<8x8xf32>
    %cst_25 = arith.constant dense<0.000000e+00> : vector<8x256xf32>
    %51 = tpu.matmul %50, %1, %cst_25 {dimension_numbers = #tpu.dot_dimension_numbers<[1], [0], [0], [1], [0, 0, 1, 1], [], []>} : vector<8x8xf32>, vector<8x256xf32>, vector<8x256xf32> -> vector<8x256xf32>
    %52 = arith.addf %48, %51 : vector<8x256xf32>
    %c5 = arith.constant 5 : index
    %c0_26 = arith.constant 0 : index
    %c0_27 = arith.constant 0 : index
    %53 = vector.load %arg3[%c5, %c0_26, %c0_27] : memref<9x8x8xf32, #tpu.memory_space<vmem>>, vector<1x8x8xf32>
    %54 = vector.shape_cast %53 : vector<1x8x8xf32> to vector<8x8xf32>
    %cst_28 = arith.constant dense<0.000000e+00> : vector<8x256xf32>
    %55 = tpu.matmul %54, %44, %cst_28 {dimension_numbers = #tpu.dot_dimension_numbers<[1], [0], [0], [1], [0, 0, 1, 1], [], []>} : vector<8x8xf32>, vector<8x256xf32>, vector<8x256xf32> -> vector<8x256xf32>
    %56 = arith.addf %52, %55 : vector<8x256xf32>
    %c1_i32_29 = arith.constant 1 : i32
    %57 = tpu.dynamic_rotate %23 by %c1_i32_29 dim 1 : vector<8x256xf32>, i32 -> vector<8x256xf32>
    %c255_i32_30 = arith.constant 255 : i32
    %58 = tpu.dynamic_rotate %23 by %c255_i32_30 dim 1 : vector<8x256xf32>, i32 -> vector<8x256xf32>
    %59 = arith.select %7, %58, %57 : vector<8x256xi1>, vector<8x256xf32>
    %60 = arith.select %11, %57, %58 : vector<8x256xi1>, vector<8x256xf32>
    %c6 = arith.constant 6 : index
    %c0_31 = arith.constant 0 : index
    %c0_32 = arith.constant 0 : index
    %61 = vector.load %arg3[%c6, %c0_31, %c0_32] : memref<9x8x8xf32, #tpu.memory_space<vmem>>, vector<1x8x8xf32>
    %62 = vector.shape_cast %61 : vector<1x8x8xf32> to vector<8x8xf32>
    %cst_33 = arith.constant dense<0.000000e+00> : vector<8x256xf32>
    %63 = tpu.matmul %62, %59, %cst_33 {dimension_numbers = #tpu.dot_dimension_numbers<[1], [0], [0], [1], [0, 0, 1, 1], [], []>} : vector<8x8xf32>, vector<8x256xf32>, vector<8x256xf32> -> vector<8x256xf32>
    %64 = arith.addf %56, %63 : vector<8x256xf32>
    %c7 = arith.constant 7 : index
    %c0_34 = arith.constant 0 : index
    %c0_35 = arith.constant 0 : index
    %65 = vector.load %arg3[%c7, %c0_34, %c0_35] : memref<9x8x8xf32, #tpu.memory_space<vmem>>, vector<1x8x8xf32>
    %66 = vector.shape_cast %65 : vector<1x8x8xf32> to vector<8x8xf32>
    %cst_36 = arith.constant dense<0.000000e+00> : vector<8x256xf32>
    %67 = tpu.matmul %66, %23, %cst_36 {dimension_numbers = #tpu.dot_dimension_numbers<[1], [0], [0], [1], [0, 0, 1, 1], [], []>} : vector<8x8xf32>, vector<8x256xf32>, vector<8x256xf32> -> vector<8x256xf32>
    %68 = arith.addf %64, %67 : vector<8x256xf32>
    %c8 = arith.constant 8 : index
    %c0_37 = arith.constant 0 : index
    %c0_38 = arith.constant 0 : index
    %69 = vector.load %arg3[%c8, %c0_37, %c0_38] : memref<9x8x8xf32, #tpu.memory_space<vmem>>, vector<1x8x8xf32>
    %70 = vector.shape_cast %69 : vector<1x8x8xf32> to vector<8x8xf32>
    %cst_39 = arith.constant dense<0.000000e+00> : vector<8x256xf32>
    %71 = tpu.matmul %70, %60, %cst_39 {dimension_numbers = #tpu.dot_dimension_numbers<[1], [0], [0], [1], [0, 0, 1, 1], [], []>} : vector<8x8xf32>, vector<8x256xf32>, vector<8x256xf32> -> vector<8x256xf32>
    %72 = arith.addf %68, %71 : vector<8x256xf32>
    %cst_40 = arith.constant dense<0.000000e+00> : vector<8xf32>
    %73 = vector.multi_reduction <add>, %72, %cst_40 [1] : vector<8x256xf32> to vector<8xf32>
    %74 = vector.shape_cast %73 : vector<8xf32> to vector<8x1xf32>
    %cst_41 = arith.constant 3.906250e-03 : f32
    %75 = vector.broadcast %cst_41 : f32 to vector<8x1xf32>
    %76 = arith.mulf %74, %75 : vector<8x1xf32>
    %77 = vector.broadcast %76 : vector<8x1xf32> to vector<8x256xf32>
    %78 = arith.subf %72, %77 : vector<8x256xf32>
    %79 = arith.mulf %78, %78 : vector<8x256xf32>
    %cst_42 = arith.constant dense<0.000000e+00> : vector<8xf32>
    %80 = vector.multi_reduction <add>, %79, %cst_42 [1] : vector<8x256xf32> to vector<8xf32>
    %81 = vector.shape_cast %80 : vector<8xf32> to vector<8x1xf32>
    %cst_43 = arith.constant 3.906250e-03 : f32
    %82 = vector.broadcast %cst_43 : f32 to vector<8x1xf32>
    %83 = arith.mulf %81, %82 : vector<8x1xf32>
    %cst_44 = arith.constant 9.99999974E-6 : f32
    %84 = vector.broadcast %cst_44 : f32 to vector<8x1xf32>
    %85 = arith.addf %83, %84 : vector<8x1xf32>
    %86 = math.rsqrt %85 : vector<8x1xf32>
    %87 = vector.broadcast %86 : vector<8x1xf32> to vector<8x256xf32>
    %88 = arith.mulf %78, %87 : vector<8x256xf32>
    %cst_45 = arith.constant 0.000000e+00 : f32
    %89 = vector.broadcast %cst_45 : f32 to vector<8x256xf32>
    %90 = arith.maximumf %88, %89 : vector<8x256xf32>
    %c16_i32_46 = arith.constant 16 : i32
    %91 = tpu.dynamic_rotate %90 by %c16_i32_46 dim 1 : vector<8x256xf32>, i32 -> vector<8x256xf32>
    %c240_i32_47 = arith.constant 240 : i32
    %92 = tpu.dynamic_rotate %90 by %c240_i32_47 dim 1 : vector<8x256xf32>, i32 -> vector<8x256xf32>
    %93 = arith.select %15, %92, %91 : vector<8x256xi1>, vector<8x256xf32>
    %94 = arith.select %19, %91, %92 : vector<8x256xi1>, vector<8x256xf32>
    %cst_48 = arith.constant 0.000000e+00 : f32
    %95 = vector.broadcast %cst_48 : f32 to vector<8x256xf32>
    %c1_i32_49 = arith.constant 1 : i32
    %96 = tpu.dynamic_rotate %93 by %c1_i32_49 dim 1 : vector<8x256xf32>, i32 -> vector<8x256xf32>
    %c255_i32_50 = arith.constant 255 : i32
    %97 = tpu.dynamic_rotate %93 by %c255_i32_50 dim 1 : vector<8x256xf32>, i32 -> vector<8x256xf32>
    %98 = arith.select %7, %97, %96 : vector<8x256xi1>, vector<8x256xf32>
    %99 = arith.select %11, %96, %97 : vector<8x256xi1>, vector<8x256xf32>
    %c0_51 = arith.constant 0 : index
    %c0_52 = arith.constant 0 : index
    %c0_53 = arith.constant 0 : index
    %100 = vector.load %arg4[%c0_51, %c0_52, %c0_53] : memref<9x8x8xf32, #tpu.memory_space<vmem>>, vector<1x8x8xf32>
    %101 = vector.shape_cast %100 : vector<1x8x8xf32> to vector<8x8xf32>
    %cst_54 = arith.constant dense<0.000000e+00> : vector<8x256xf32>
    %102 = tpu.matmul %101, %98, %cst_54 {dimension_numbers = #tpu.dot_dimension_numbers<[1], [0], [0], [1], [0, 0, 1, 1], [], []>} : vector<8x8xf32>, vector<8x256xf32>, vector<8x256xf32> -> vector<8x256xf32>
    %103 = arith.addf %95, %102 : vector<8x256xf32>
    %c1_55 = arith.constant 1 : index
    %c0_56 = arith.constant 0 : index
    %c0_57 = arith.constant 0 : index
    %104 = vector.load %arg4[%c1_55, %c0_56, %c0_57] : memref<9x8x8xf32, #tpu.memory_space<vmem>>, vector<1x8x8xf32>
    %105 = vector.shape_cast %104 : vector<1x8x8xf32> to vector<8x8xf32>
    %cst_58 = arith.constant dense<0.000000e+00> : vector<8x256xf32>
    %106 = tpu.matmul %105, %93, %cst_58 {dimension_numbers = #tpu.dot_dimension_numbers<[1], [0], [0], [1], [0, 0, 1, 1], [], []>} : vector<8x8xf32>, vector<8x256xf32>, vector<8x256xf32> -> vector<8x256xf32>
    %107 = arith.addf %103, %106 : vector<8x256xf32>
    %c2_59 = arith.constant 2 : index
    %c0_60 = arith.constant 0 : index
    %c0_61 = arith.constant 0 : index
    %108 = vector.load %arg4[%c2_59, %c0_60, %c0_61] : memref<9x8x8xf32, #tpu.memory_space<vmem>>, vector<1x8x8xf32>
    %109 = vector.shape_cast %108 : vector<1x8x8xf32> to vector<8x8xf32>
    %cst_62 = arith.constant dense<0.000000e+00> : vector<8x256xf32>
    %110 = tpu.matmul %109, %99, %cst_62 {dimension_numbers = #tpu.dot_dimension_numbers<[1], [0], [0], [1], [0, 0, 1, 1], [], []>} : vector<8x8xf32>, vector<8x256xf32>, vector<8x256xf32> -> vector<8x256xf32>
    %111 = arith.addf %107, %110 : vector<8x256xf32>
    %c1_i32_63 = arith.constant 1 : i32
    %112 = tpu.dynamic_rotate %90 by %c1_i32_63 dim 1 : vector<8x256xf32>, i32 -> vector<8x256xf32>
    %c255_i32_64 = arith.constant 255 : i32
    %113 = tpu.dynamic_rotate %90 by %c255_i32_64 dim 1 : vector<8x256xf32>, i32 -> vector<8x256xf32>
    %114 = arith.select %7, %113, %112 : vector<8x256xi1>, vector<8x256xf32>
    %115 = arith.select %11, %112, %113 : vector<8x256xi1>, vector<8x256xf32>
    %c3_65 = arith.constant 3 : index
    %c0_66 = arith.constant 0 : index
    %c0_67 = arith.constant 0 : index
    %116 = vector.load %arg4[%c3_65, %c0_66, %c0_67] : memref<9x8x8xf32, #tpu.memory_space<vmem>>, vector<1x8x8xf32>
    %117 = vector.shape_cast %116 : vector<1x8x8xf32> to vector<8x8xf32>
    %cst_68 = arith.constant dense<0.000000e+00> : vector<8x256xf32>
    %118 = tpu.matmul %117, %114, %cst_68 {dimension_numbers = #tpu.dot_dimension_numbers<[1], [0], [0], [1], [0, 0, 1, 1], [], []>} : vector<8x8xf32>, vector<8x256xf32>, vector<8x256xf32> -> vector<8x256xf32>
    %119 = arith.addf %111, %118 : vector<8x256xf32>
    %c4_69 = arith.constant 4 : index
    %c0_70 = arith.constant 0 : index
    %c0_71 = arith.constant 0 : index
    %120 = vector.load %arg4[%c4_69, %c0_70, %c0_71] : memref<9x8x8xf32, #tpu.memory_space<vmem>>, vector<1x8x8xf32>
    %121 = vector.shape_cast %120 : vector<1x8x8xf32> to vector<8x8xf32>
    %cst_72 = arith.constant dense<0.000000e+00> : vector<8x256xf32>
    %122 = tpu.matmul %121, %90, %cst_72 {dimension_numbers = #tpu.dot_dimension_numbers<[1], [0], [0], [1], [0, 0, 1, 1], [], []>} : vector<8x8xf32>, vector<8x256xf32>, vector<8x256xf32> -> vector<8x256xf32>
    %123 = arith.addf %119, %122 : vector<8x256xf32>
    %c5_73 = arith.constant 5 : index
    %c0_74 = arith.constant 0 : index
    %c0_75 = arith.constant 0 : index
    %124 = vector.load %arg4[%c5_73, %c0_74, %c0_75] : memref<9x8x8xf32, #tpu.memory_space<vmem>>, vector<1x8x8xf32>
    %125 = vector.shape_cast %124 : vector<1x8x8xf32> to vector<8x8xf32>
    %cst_76 = arith.constant dense<0.000000e+00> : vector<8x256xf32>
    %126 = tpu.matmul %125, %115, %cst_76 {dimension_numbers = #tpu.dot_dimension_numbers<[1], [0], [0], [1], [0, 0, 1, 1], [], []>} : vector<8x8xf32>, vector<8x256xf32>, vector<8x256xf32> -> vector<8x256xf32>
    %127 = arith.addf %123, %126 : vector<8x256xf32>
    %c1_i32_77 = arith.constant 1 : i32
    %128 = tpu.dynamic_rotate %94 by %c1_i32_77 dim 1 : vector<8x256xf32>, i32 -> vector<8x256xf32>
    %c255_i32_78 = arith.constant 255 : i32
    %129 = tpu.dynamic_rotate %94 by %c255_i32_78 dim 1 : vector<8x256xf32>, i32 -> vector<8x256xf32>
    %130 = arith.select %7, %129, %128 : vector<8x256xi1>, vector<8x256xf32>
    %131 = arith.select %11, %128, %129 : vector<8x256xi1>, vector<8x256xf32>
    %c6_79 = arith.constant 6 : index
    %c0_80 = arith.constant 0 : index
    %c0_81 = arith.constant 0 : index
    %132 = vector.load %arg4[%c6_79, %c0_80, %c0_81] : memref<9x8x8xf32, #tpu.memory_space<vmem>>, vector<1x8x8xf32>
    %133 = vector.shape_cast %132 : vector<1x8x8xf32> to vector<8x8xf32>
    %cst_82 = arith.constant dense<0.000000e+00> : vector<8x256xf32>
    %134 = tpu.matmul %133, %130, %cst_82 {dimension_numbers = #tpu.dot_dimension_numbers<[1], [0], [0], [1], [0, 0, 1, 1], [], []>} : vector<8x8xf32>, vector<8x256xf32>, vector<8x256xf32> -> vector<8x256xf32>
    %135 = arith.addf %127, %134 : vector<8x256xf32>
    %c7_83 = arith.constant 7 : index
    %c0_84 = arith.constant 0 : index
    %c0_85 = arith.constant 0 : index
    %136 = vector.load %arg4[%c7_83, %c0_84, %c0_85] : memref<9x8x8xf32, #tpu.memory_space<vmem>>, vector<1x8x8xf32>
    %137 = vector.shape_cast %136 : vector<1x8x8xf32> to vector<8x8xf32>
    %cst_86 = arith.constant dense<0.000000e+00> : vector<8x256xf32>
    %138 = tpu.matmul %137, %94, %cst_86 {dimension_numbers = #tpu.dot_dimension_numbers<[1], [0], [0], [1], [0, 0, 1, 1], [], []>} : vector<8x8xf32>, vector<8x256xf32>, vector<8x256xf32> -> vector<8x256xf32>
    %139 = arith.addf %135, %138 : vector<8x256xf32>
    %c8_87 = arith.constant 8 : index
    %c0_88 = arith.constant 0 : index
    %c0_89 = arith.constant 0 : index
    %140 = vector.load %arg4[%c8_87, %c0_88, %c0_89] : memref<9x8x8xf32, #tpu.memory_space<vmem>>, vector<1x8x8xf32>
    %141 = vector.shape_cast %140 : vector<1x8x8xf32> to vector<8x8xf32>
    %cst_90 = arith.constant dense<0.000000e+00> : vector<8x256xf32>
    %142 = tpu.matmul %141, %131, %cst_90 {dimension_numbers = #tpu.dot_dimension_numbers<[1], [0], [0], [1], [0, 0, 1, 1], [], []>} : vector<8x8xf32>, vector<8x256xf32>, vector<8x256xf32> -> vector<8x256xf32>
    %143 = arith.addf %139, %142 : vector<8x256xf32>
    %cst_91 = arith.constant dense<0.000000e+00> : vector<8xf32>
    %144 = vector.multi_reduction <add>, %143, %cst_91 [1] : vector<8x256xf32> to vector<8xf32>
    %145 = vector.shape_cast %144 : vector<8xf32> to vector<8x1xf32>
    %cst_92 = arith.constant 3.906250e-03 : f32
    %146 = vector.broadcast %cst_92 : f32 to vector<8x1xf32>
    %147 = arith.mulf %145, %146 : vector<8x1xf32>
    %148 = vector.broadcast %147 : vector<8x1xf32> to vector<8x256xf32>
    %149 = arith.subf %143, %148 : vector<8x256xf32>
    %150 = arith.mulf %149, %149 : vector<8x256xf32>
    %cst_93 = arith.constant dense<0.000000e+00> : vector<8xf32>
    %151 = vector.multi_reduction <add>, %150, %cst_93 [1] : vector<8x256xf32> to vector<8xf32>
    %152 = vector.shape_cast %151 : vector<8xf32> to vector<8x1xf32>
    %cst_94 = arith.constant 3.906250e-03 : f32
    %153 = vector.broadcast %cst_94 : f32 to vector<8x1xf32>
    %154 = arith.mulf %152, %153 : vector<8x1xf32>
    %cst_95 = arith.constant 9.99999974E-6 : f32
    %155 = vector.broadcast %cst_95 : f32 to vector<8x1xf32>
    %156 = arith.addf %154, %155 : vector<8x1xf32>
    %157 = math.rsqrt %156 : vector<8x1xf32>
    %158 = vector.broadcast %157 : vector<8x1xf32> to vector<8x256xf32>
    %159 = arith.mulf %149, %158 : vector<8x256xf32>
    %160 = arith.addf %1, %159 : vector<8x256xf32>
    %c0_96 = arith.constant 0 : index
    %c0_97 = arith.constant 0 : index
    %c0_98 = arith.constant 0 : index
    %161 = vector.load %arg5[%c0_96, %c0_97, %c0_98] : memref<1x8x256xf32, #tpu.memory_space<vmem>>, vector<1x8x256xf32>
    %162 = vector.shape_cast %161 : vector<1x8x256xf32> to vector<8x256xf32>
    %163 = vector.shape_cast %160 : vector<8x256xf32> to vector<1x8x256xf32>
    tpu.vector_store %arg5[%c0_96, %c0_97, %c0_98], %163 {strides = array<i32>} : memref<1x8x256xf32, #tpu.memory_space<vmem>>, vector<1x8x256xf32>,
    return
  }
  func.func @transform_0(%arg0: i32) -> (i32, i32, i32) {
    %c0_i32 = arith.constant 0 : i32
    %c0_i32_0 = arith.constant 0 : i32
    %c0_i32_1 = arith.constant 0 : i32
    return %arg0, %c0_i32, %c0_i32_0 : i32, i32, i32
  }
  func.func @transform_1(%arg0: i32) -> (i32, i32) {
    %c0_i32 = arith.constant 0 : i32
    %c0_i32_0 = arith.constant 0 : i32
    %c0_i32_1 = arith.constant 0 : i32
    return %c0_i32, %c0_i32_0 : i32, i32
  }
  func.func @transform_2(%arg0: i32) -> (i32, i32, i32) {
    %c0_i32 = arith.constant 0 : i32
    %c0_i32_0 = arith.constant 0 : i32
    %c0_i32_1 = arith.constant 0 : i32
    %c0_i32_2 = arith.constant 0 : i32
    return %c0_i32, %c0_i32_0, %c0_i32_1 : i32, i32, i32
  }
  func.func @transform_3(%arg0: i32) -> (i32, i32, i32) {
    %c0_i32 = arith.constant 0 : i32
    %c0_i32_0 = arith.constant 0 : i32
    %c0_i32_1 = arith.constant 0 : i32
    %c0_i32_2 = arith.constant 0 : i32
    return %c0_i32, %c0_i32_0, %c0_i32_1 : i32, i32, i32
  }
  func.func @transform_4(%arg0: i32) -> (i32, i32, i32) {
    %c0_i32 = arith.constant 0 : i32
    %c0_i32_0 = arith.constant 0 : i32
    %c0_i32_1 = arith.constant 0 : i32
    return %arg0, %c0_i32, %c0_i32_0 : i32, i32, i32
  }
}

</mosaic_0001>

<bundles_post_ra>
// kernel: tpu_custom_call.1
= control target key start
LH: loop header
LB: loop body
LE: loop exit
PB: predicated region body
PF: predicated region fallthrough
CT: control target
= control target key end

     0   :  { %9 = vsyncpa [#allocation3], 0  ;;  %s2572_s0 = inlined_call_operand.vmem [shape: f32[2,8,256], index: 0, kind: input, shape index: {}]   ;;  %s2573_s1 = inlined_call_operand.vmem [shape: s32[2,256], index: 1, kind: input, shape index: {}]   ;;  %s2574_s2 = inlined_call_operand.vmem [shape: f32[9,8,8], index: 2, kind: input, shape index: {}]   ;;  %s2575_s3 = inlined_call_operand.vmem [shape: f32[9,8,8], index: 3, kind: input, shape index: {}]   ;;  %s2576_s4 = inlined_call_operand.hbm [shape: f32[2,8,256], index: 4, kind: output, shape index: {}]  }
   0x1   :  { %11 = vsyncpa [#allocation3 + $0x1], 0  ;;  %s2116_s15 = smov 0   ;;  %s2118_s16 = smov 0  }
   0x2   :  { %s2120_s17 = smov 0   ;;  %s2122_s18 = smov 0  }
   0x3 LB: > { %s2137_s19 = sadd.s32 4294967295, %s2082_s18   ;;  %s1890_s20 = sadd.s32 4294967294, %s2082_s18   ;;  %s2082_s18 = sphi %s2122_s18, %s2598_s18   ;;  %s2078_s17 = sphi %s2120_s17, %s2597_s17   ;;  %s2074_s16 = sphi %s2118_s16, %s2596_s16   ;;  %s2070_s15 = sphi %s2116_s15, %s2595_s15  }
   0x4   : > { %s2141_s21 = sadd.s32 1, %s2082_s18   ;;  %s113_s22 = sadd.s32 1, %s2078_s17 }
   0x5   : > { %s110_s23 = ssub.s32 %s2082_s18, %s2141_s21  ;;  %p123_p0 = scmp.ne.s32.totalorder %s2078_s17, %s2074_s16 }
   0x6   : > { %p111_p1 = scmp.eq.s32.totalorder %s110_s23, 0  ;;  %p124_p2 = scmp.eq.s32.totalorder %s2137_s19, 1 }
   0x7   : > { %p129_p3 = scmp.ne.s32.totalorder %s2074_s16, %s2070_s15  ;;  %p130_p4 = scmp.eq.s32.totalorder %s1890_s20, 1 }
   0x8   : > { %s2152_s24 = scalar_select %p111_p1, %s2078_s17, %s113_s22  }
   0x9   : > { %p2154_p5 = por %p124_p2, %p123_p0  ;;  %p2158_p6 = por %p130_p4, %p129_p3 }
   0xa   : > { %p1893_p7 = scmp.ge.s32.totalorder %s2082_s18, 1  ;;  %p165_p8 = scmp.lt.s32.totalorder %s2082_s18, 3 }
   0xc   : > { %p166_p9 = pnand %p1893_p7, %p165_p8 }
   0xd   : > { %p191_p10 = scmp.lt.s32.totalorder (!%p166_p9), %s2137_s19, 1  ;;  %s2084_s6 = smov (!%p166_p9), 112   ;;  %v2086_v2 = vmov (!%p166_p9), 0.0   ;;  %v203_v3 = vlaneseq (!%p166_p9)  ;;  %v1897_v4 = vld [vmem:[%s2573_s1 + $0x1] ss:$2 sm:$0x3] (!%p166_p9) }
   0xe   : > { %169 = sbr.rel (%p166_p9) target bundleno = 1693 (0x69d), region = 36  ;;  %s2085_s7 = smov (!%p166_p9), 16   ;;  %358 = vmatprep.mubr.f32.mxu0 (!%p166_p9), %v2086_v2  ;;  %1137 = vmatprep.mubr.f32.mxu1 (!%p166_p9), %v2086_v2  ;;  %vm225_vm0 = vcmp.eq.s32.totalorder (!%p166_p9), %v1897_v4, 0  ;;  %v2087_v8 = vmov (!%p166_p9), 0   ;;  %v1898_v25 = vld [vmem:[%s2574_s2 + $0x8] sm:$0xff] (!%p166_p9)  ;;  %vm290_vm5 = vcmask (!%p166_p9), 64512  }
   0xf   : > { %v204_v5 = vshrl.u32 (!%p166_p9), %v203_v3, 7  ;;  %v226_v9 = vsel (!%p166_p9), %vm225_vm0, 1, %v2087_v8  ;;  %v2190_v10 = vand.u32 (!%p166_p9), 127, %v203_v3  ;;  %s2088_s10 = smov (!%p166_p9), 1   ;;  %vm237_vm6 = vcmp.eq.s32.totalorder (!%p166_p9), %v1897_v4, 15  ;;  %s2089_s13 = smov (!%p166_p9), 127  }
  0x10   : > { %v238_v26 = vsel (!%p166_p9), %vm237_vm6, 1, %v2087_v8  ;;  %v198_v33 = vld [vmem:[%s2573_s1] ss:$2 sm:$0x3] (!%p166_p9)  ;;  %v1901_v4 = vld [vmem:[%s2574_s2 + $0x10] sm:$0xff] (!%p166_p9)  ;;  %v1928_v43 = vld [vmem:[%s2575_s3 + $0x38] sm:$0xff] (!%p166_p9) }
  0x11   : > { %v2186_v6 = vsub.s32 (!%p166_p9), 0, %v204_v5  ;;  %v2188_v7 = vsub.s32 (!%p166_p9), 1, %v204_v5  ;;  %vm262_vm1 = vcmp.lt.s32.totalorder (!%p166_p9), %v2190_v10, 112  ;;  %vm255_vm2 = vcmp.lt.s32.totalorder (!%p166_p9), %v2190_v10, 16  ;;  %v287_v53 = vld [vmem:[%s2574_s2] sm:$0xff] (!%p166_p9)  ;;  %v1926_v42 = vld [vmem:[%s2575_s3 + $0x30] sm:$0xff] (!%p166_p9) }
  0x12   : > { %vm201_vm9 = vcmp.eq.s32.totalorder (!%p166_p9), %v198_v33, 0  ;;  %vm213_vm10 = vcmp.eq.s32.totalorder (!%p166_p9), %v198_v33, 15  ;;  %vm273_vm11 = vcmp.lt.s32.totalorder (!%p166_p9), %v2190_v10, 1  ;;  %vm280_vm12 = vcmp.lt.s32.totalorder (!%p166_p9), %v2190_v10, 127  ;;  %v1930_v46 = vld [vmem:[%s2575_s3 + $0x40] sm:$0xff] (!%p166_p9)  ;;  %s2090_s11 = smov (!%p166_p9), [#allocation2]  }
  0x13   : > { %v230_v11 = vrot.slane (!%p166_p9), %v226_v9, %v2186_v6  ;;  %v234_v12 = vrot.slane (!%p166_p9), %v226_v9, %v2188_v7  ;;  %v242_v27 = vrot.slane (!%p166_p9), %v238_v26, %v2186_v6  ;;  %v246_v28 = vrot.slane (!%p166_p9), %v238_v26, %v2188_v7  ;;  %v1903_v9 = vld [vmem:[%s2574_s2 + $0x18] sm:$0xff] (!%p166_p9)  ;;  %s2024_s12 = sshll.u32 (!%p166_p9), %s2090_s11, 4  ;;  %s2025_s12 = int_to_ptr.vmem [resolvable:$false] %s2024_s12 }
  0x14   : > { %v202_v34 = vsel (!%p166_p9), %vm201_vm9, 1, %v2087_v8  ;;  %v214_v35 = vsel (!%p166_p9), %vm213_vm10, 1, %v2087_v8  ;;  %s2026_s14 = scalar_lea.vmem (!%p166_p9), %s2025_s12, 512 }
  0x15   : > { %s192_s27 = scalar_select %p191_p10, %s2137_s19, 1  ;;  %vm2196_vm3 = vcmp.eq.s32.totalorder %v230_v11, 1  ;;  %vm2200_vm4 = vcmp.eq.s32.totalorder %v234_v12, 1  ;;  %vm2235_vm7 = vcmp.eq.s32.totalorder %v242_v27, 1  ;;  %vm2239_vm8 = vcmp.eq.s32.totalorder %v246_v28, 1  ;;  %v1911_v27 = vld [vmem:[%s2574_s2 + $0x38] sm:$0xff] }
  0x16   : > { %v210_v36 = vrot.slane %v202_v34, %v2188_v7  ;;  %v206_v37 = vrot.slane %v202_v34, %v2186_v6  ;;  %v222_v40 = vrot.slane %v214_v35, %v2188_v7  ;;  %v218_v41 = vrot.slane %v214_v35, %v2186_v6 }
  0x17   : > { %s1937_s28 = sshll.u32 %s192_s27, 4 }
  0x18   : > { %s195_s5 = scalar_lea.vmem %s2572_s0, %s1937_s28  ;;  %vm2268_vm13 = vcmp.eq.s32.totalorder %v210_v36, 1  ;;  %vm2272_vm14 = vcmp.eq.s32.totalorder %v206_v37, 1  ;;  %vm2276_vm15 = vcmp.eq.s32.totalorder %v222_v40, 1  ;;  %vm2295_vm0 = vcmp.eq.s32.totalorder %v218_v41, 1 }
  0x19   : > { %v2169_v0 = vld [vmem:[%s195_s5] sm:$0xff]  ;;  %v2175_v1 = vld [vmem:[%s195_s5 + $0x8] sm:$0xff] }
  0x1a   : > { %258 = vrot.lane.b32.xlu1 %v2169_v0, %s2084_s6  ;;  %249 = vrot.lane.b32.xlu0 %v2169_v0, %s2085_s7 }
  0x1e   : > { %260 = vrot.lane.b32.xlu1 %v2175_v1, %s2084_s6  ;;  %251 = vrot.lane.b32.xlu0 %v2175_v1, %s2085_s7 }
  0x8c   : > { %v259_v13 = vpop.permute.xlu1 %258  ;;  %v250_v14 = vpop.permute.xlu0 %249 }
  0x90   : > { %v261_v17 = vpop.permute.xlu1 %260  ;;  %v252_v18 = vpop.permute.xlu0 %251 }
  0x91   : > { %v263_v19 = vsel %vm262_vm1, %v259_v13, %v261_v17  ;;  %v264_v20 = vsel %vm262_vm1, %v261_v17, %v259_v13  ;;  %v256_v21 = vsel %vm255_vm2, %v250_v14, %v252_v18  ;;  %v257_v22 = vsel %vm255_vm2, %v252_v18, %v250_v14  ;;  %v1905_v14 = vld [vmem:[%s2574_s2 + $0x20] sm:$0xff] }
  0x92   : > { %v265_v23 = vsel %vm2196_vm3, %v263_v19, %v257_v22  ;;  %v266_v24 = vsel %vm2200_vm4, %v264_v20, %v256_v21  ;;  %v2245_v31 = vsel %vm2235_vm7, %v257_v22, %v263_v19  ;;  %v2249_v32 = vsel %vm2239_vm8, %v256_v21, %v264_v20  ;;  %v1907_v22 = vld [vmem:[%s2574_s2 + $0x28] sm:$0xff] }
  0x93   : > { %269 = vrot.lane.b32.xlu0 %v265_v23, %s2088_s10  ;;  %271 = vrot.lane.b32.xlu1 %v266_v24, %s2088_s10 }
  0x94   : > { %294 = vmatprep.subr.mxu0 %v266_v24 }
  0x95   : > { %295 = vmatpush1.msra.mxu0 %v265_v23 }
  0x96   : > { %1899 = vmatmul.mubr.msk.f32.vlgmr.msra.gmra.mrb[0].mxu0 %vm290_vm5, %v1898_v25  ;;  %v1909_v25 = vld [vmem:[%s2574_s2 + $0x30] sm:$0xff] }
  0x97   : > { %276 = vrot.lane.b32.xlu0 %v265_v23, %s2089_s13  ;;  %278 = vrot.lane.b32.xlu1 %v266_v24, %s2089_s13 }
  0x98   : > { %432 = vmatprep.mubr.f32.mxu0 %v2086_v2 }
  0x9b   : > { %517 = vrot.lane.b32.xlu0 %v2169_v0, %s2088_s10  ;;  %519 = vrot.lane.b32.xlu1 %v2175_v1, %s2088_s10 }
  0x9f   : > { %523 = vrot.lane.b32.xlu0 %v2169_v0, %s2089_s13  ;;  %525 = vrot.lane.b32.xlu1 %v2175_v1, %s2089_s13 }
  0xa3   : > { %767 = vrot.lane.b32.xlu0 %v2245_v31, %s2088_s10  ;;  %769 = vrot.lane.b32.xlu1 %v2249_v32, %s2088_s10 }
  0xa7   : > { %773 = vrot.lane.b32.xlu0 %v2245_v31, %s2089_s13  ;;  %775 = vrot.lane.b32.xlu1 %v2249_v32, %s2089_s13 }
 0x105   : > { %v270_v38 = vpop.permute.xlu0 %269  ;;  %v272_v39 = vpop.permute.xlu1 %271 }
 0x106   : > { %v274_v47 = vsel %vm273_vm11, %v270_v38, %v272_v39  ;;  %v275_v48 = vsel %vm273_vm11, %v272_v39, %v270_v38 }
 0x109   : > { %v277_v44 = vpop.permute.xlu0 %276  ;;  %v279_v45 = vpop.permute.xlu1 %278 }
 0x10a   : > { %v281_v49 = vsel %vm280_vm12, %v277_v44, %v279_v45  ;;  %v282_v50 = vsel %vm280_vm12, %v279_v45, %v277_v44 }
 0x10b   : > { %v284_v51 = vsel %vm2268_vm13, %v282_v50, %v274_v47  ;;  %v283_v52 = vsel %vm2272_vm14, %v281_v49, %v275_v48  ;;  %v286_v57 = vsel %vm2276_vm15, %v274_v47, %v282_v50  ;;  %v285_v58 = vsel %vm2295_vm0, %v275_v48, %v281_v49 }
 0x10c   : > { %368 = vmatprep.subr.mxu0 %v284_v51 }
 0x10d   : > { %v518_v55 = vpop.permute.xlu0 %517  ;;  %v520_v56 = vpop.permute.xlu1 %519  ;;  %369 = vmatpush1.msra.mxu0 %v283_v52 }
 0x10e   : > { %1900 = vmatmul.mubr.msk.f32.vlgmr.msra.gmra.mrb[0].mxu0 %vm290_vm5, %v287_v53  ;;  %444 = vmatprep.subr.mxu0 %v286_v57  ;;  %v521_v59 = vsel %vm273_vm11, %v518_v55, %v520_v56  ;;  %v522_v60 = vsel %vm273_vm11, %v520_v56, %v518_v55 }
 0x10f   : > { %445 = vmatpush1.msra.mxu0 %v285_v58  ;;  %508 = vmatprep.mubr.f32.mxu0 %v2086_v2 }
 0x111   : > { %v524_v61 = vpop.permute.xlu0 %523  ;;  %v526_v62 = vpop.permute.xlu1 %525 }
 0x112   : > { %v527_v63 = vsel %vm280_vm12, %v524_v61, %v526_v62  ;;  %v528_v3 = vsel %vm280_vm12, %v526_v62, %v524_v61 }
 0x113   : > { %v530_v5 = vsel %vm2268_vm13, %v528_v3, %v521_v59  ;;  %v529_v6 = vsel %vm2272_vm14, %v527_v63, %v522_v60  ;;  %v532_v11 = vsel %vm2276_vm15, %v521_v59, %v528_v3  ;;  %v531_v19 = vsel %vm2295_vm0, %v522_v60, %v527_v63  ;;  %v1915_v3 = vld [vmem:[%s2575_s3 + $0x8] sm:$0xff] }
 0x114   : > { %538 = vmatprep.subr.mxu0 %v530_v5 }
 0x115   : > { %v768_v7 = vpop.permute.xlu0 %767  ;;  %v770_v8 = vpop.permute.xlu1 %769 }
 0x116   : > { %1902 = vmatmul.mubr.msk.f32.vlgmr.msra.gmra.mrb[0].mxu0 %vm290_vm5, %v1901_v4  ;;  %v771_v18 = vsel %vm273_vm11, %v768_v7, %v770_v8  ;;  %v772_v23 = vsel %vm273_vm11, %v770_v8, %v768_v7 }
 0x117   : > { %539 = vmatpush1.msra.mxu0 %v529_v6  ;;  %602 = vmatprep.mubr.f32.mxu0 %v2086_v2 }
 0x118   : > { %616 = vmatprep.subr.mxu0 %v2175_v1 }
 0x119   : > { %v774_v12 = vpop.permute.xlu0 %773  ;;  %v776_v13 = vpop.permute.xlu1 %775 }
 0x11a   : > { %v778_v17 = vsel %vm280_vm12, %v776_v13, %v774_v12  ;;  %v777_v21 = vsel %vm280_vm12, %v774_v12, %v776_v13  ;;  %v1067_v13 = vld [vmem:[%s2575_s3] sm:$0xff] }
 0x11b   : > { %v780_v20 = vsel %vm2268_vm13, %v778_v17, %v771_v18  ;;  %v779_v24 = vsel %vm2272_vm14, %v777_v21, %v772_v23  ;;  %v782_v26 = vsel %vm2276_vm15, %v771_v18, %v778_v17  ;;  %v781_v28 = vsel %vm2295_vm0, %v772_v23, %v777_v21 }
 0x11e   : > { %1904 = vmatmul.mubr.msk.f32.vlgmr.msra.gmra.mrb[0].mxu0 %vm290_vm5, %v1903_v9 }
 0x11f   : > { %617 = vmatpush1.msra.mxu0 %v2169_v0  ;;  %680 = vmatprep.mubr.f32.mxu0 %v2086_v2 }
 0x120   : > { %694 = vmatprep.subr.mxu0 %v532_v11 }
 0x126   : > { %1906 = vmatmul.mubr.msk.f32.vlgmr.msra.gmra.mrb[0].mxu0 %vm290_vm5, %v1905_v14 }
 0x127   : > { %695 = vmatpush1.msra.mxu0 %v531_v19  ;;  %758 = vmatprep.mubr.f32.mxu0 %v2086_v2 }
 0x128   : > { %788 = vmatprep.subr.mxu0 %v780_v20 }
 0x12e   : > { %1908 = vmatmul.mubr.msk.f32.vlgmr.msra.gmra.mrb[0].mxu0 %vm290_vm5, %v1907_v22 }
 0x12f   : > { %789 = vmatpush1.msra.mxu0 %v779_v24  ;;  %852 = vmatprep.mubr.f32.mxu0 %v2086_v2 }
 0x130   : > { %866 = vmatprep.subr.mxu0 %v2249_v32 }
 0x136   : > { %1910 = vmatmul.mubr.msk.f32.vlgmr.msra.gmra.mrb[0].mxu0 %vm290_vm5, %v1909_v25 }
 0x137   : > { %867 = vmatpush1.msra.mxu0 %v2245_v31  ;;  %930 = vmatprep.mubr.f32.mxu0 %v2086_v2  ;;  %v1913_v31 = vld [vmem:[%s2574_s2 + $0x40] sm:$0xff] }
 0x138   : > { %944 = vmatprep.subr.mxu0 %v782_v26  ;;  %v1918_v26 = vld [vmem:[%s2575_s3 + $0x10] sm:$0xff] }
 0x13e   : > { %1912 = vmatmul.mubr.msk.f32.vlgmr.msra.gmra.mrb[0].mxu0 %vm290_vm5, %v1911_v27 }
 0x13f   : > { %945 = vmatpush1.msra.mxu0 %v781_v28  ;;  %1008 = vmatprep.mubr.f32.mxu0 %v2086_v2 }
 0x146   : > { %1914 = vmatmul.mubr.msk.f32.vlgmr.msra.gmra.mrb[0].mxu0 %vm290_vm5, %v1913_v31 }
 0x219   : > { %v1010_v32 = vpop.f32.mrb[0].mxu0 }
 0x21a   : > { %v1012_v33 = vpop.f32.mrb[1].mxu0 }
 0x21b   : > { %v1017_v34 = vadd.f32 %v1012_v33, %v1010_v32 }
 0x21d   : > { %1018 = vadd.xlane.f32.xlu0 %v1017_v34 }
 0x2aa   : > { %v1019_v35 = vpop.xlane.xlu0 %1018 }
 0x2ab   : > { %v1020_v36 = vmul.f32 0.00390625, %v1019_v35 }
 0x2ad   : > { %v1021_v37 = vsub.f32 %v1010_v32, %v1020_v36  ;;  %v1022_v38 = vsub.f32 %v1012_v33, %v1020_v36  ;;  %v1920_v33 = vld [vmem:[%s2575_s3 + $0x18] sm:$0xff] }
 0x2af   : > { %v1023_v39 = vmul.f32 %v1021_v37, %v1021_v37  ;;  %v1024_v40 = vmul.f32 %v1022_v38, %v1022_v38 }
 0x2b1   : > { %v1025_v41 = vadd.f32 %v1024_v40, %v1023_v39 }
 0x2b3   : > { %1026 = vadd.xlane.f32.xlu1 %v1025_v41 }
 0x340   : > { %v1027_v44 = vpop.xlane.xlu1 %1026 }
 0x341   : > { %v1028_v45 = vmul.f32 0.00390625, %v1027_v44 }
 0x343   : > { %v1029_v47 = vadd.f32 1e-05, %v1028_v45  ;;  %v1924_v45 = vld [vmem:[%s2575_s3 + $0x28] sm:$0xff] }
 0x345   : > { %2016 = vrsqrt.f32 %v1029_v47 }
 0x34f   : > { %v2017_v48 = vpop.eup %2016 }
 0x350   : > { %v1032_v49 = vmul.f32 %v2017_v48, %v1022_v38  ;;  %v1031_v50 = vmul.f32 %v2017_v48, %v1021_v37  ;;  %v1922_v37 = vld [vmem:[%s2575_s3 + $0x20] sm:$0xff] }
 0x352   : > { %v2375_v51 = vmax.f32 %v1032_v49, 0.0  ;;  %v2377_v52 = vmax.f32 %v1031_v50, 0.0 }
 0x354   : > { %1037 = vrot.lane.b32.xlu1 %v2375_v51, %s2085_s7  ;;  %1035 = vrot.lane.b32.xlu0 %v2377_v52, %s2085_s7  ;;  %s188_s7 = sand.u32 1, %s2074_s16  }
 0x358   : > { %1043 = vrot.lane.b32.xlu1 %v2375_v51, %s2084_s6  ;;  %1041 = vrot.lane.b32.xlu0 %v2377_v52, %s2084_s6 }
 0x3c6   : > { %v1038_v53 = vpop.permute.xlu1 %1037  ;;  %v1036_v55 = vpop.permute.xlu0 %1035 }
 0x3c7   : > { %v1039_v58 = vsel %vm255_vm2, %v1036_v55, %v1038_v53  ;;  %v1040_v59 = vsel %vm255_vm2, %v1038_v53, %v1036_v55 }
 0x3ca   : > { %v1044_v56 = vpop.permute.xlu1 %1043  ;;  %v1042_v57 = vpop.permute.xlu0 %1041 }
 0x3cb   : > { %v1045_v60 = vsel %vm262_vm1, %v1042_v57, %v1044_v56  ;;  %v1046_v61 = vsel %vm262_vm1, %v1044_v56, %v1042_v57 }
 0x3cc   : > { %v1048_v62 = vsel %vm2200_vm4, %v1046_v61, %v1039_v58  ;;  %v1047_v63 = vsel %vm2196_vm3, %v1045_v60, %v1040_v59  ;;  %v2418_v15 = vsel %vm2239_vm8, %v1039_v58, %v1046_v61  ;;  %v2424_v16 = vsel %vm2235_vm7, %v1040_v59, %v1045_v60 }
 0x3cd   : > { %1053 = vrot.lane.b32.xlu1 %v1048_v62, %s2088_s10  ;;  %1073 = vmatprep.subr.mxu1 %v1048_v62 }
 0x3ce   : > { %1051 = vrot.lane.b32.xlu0 %v1047_v63, %s2088_s10  ;;  %1074 = vmatpush1.msra.mxu1 %v1047_v63 }
 0x3cf   : > { %1916 = vmatmul.mubr.msk.f32.vlgmr.msra.gmra.mrb[0].mxu1 %vm290_vm5, %v1915_v3 }
 0x3d0   : > { %1211 = vmatprep.mubr.f32.mxu1 %v2086_v2 }
 0x3d1   : > { %1059 = vrot.lane.b32.xlu1 %v1048_v62, %s2089_s13 }
 0x3d2   : > { %1057 = vrot.lane.b32.xlu0 %v1047_v63, %s2089_s13 }
 0x3d5   : > { %1298 = vrot.lane.b32.xlu1 %v2375_v51, %s2088_s10 }
 0x3d6   : > { %1296 = vrot.lane.b32.xlu0 %v2377_v52, %s2088_s10 }
 0x3d9   : > { %1304 = vrot.lane.b32.xlu1 %v2375_v51, %s2089_s13 }
 0x3da   : > { %1302 = vrot.lane.b32.xlu0 %v2377_v52, %s2089_s13 }
 0x3dd   : > { %1548 = vrot.lane.b32.xlu1 %v2418_v15, %s2088_s10 }
 0x3de   : > { %1546 = vrot.lane.b32.xlu0 %v2424_v16, %s2088_s10  ;;  %s1894_s10 = sshll.u32 %s188_s7, 4 }
 0x3df   : > { %s190_s28 = scalar_lea.vmem [#allocation2], %s1894_s10 }
 0x3e0   : > { %s1831_s29 = sshll.u32 %s190_s28, 4  ;;  %s2532_s29 = int_to_ptr.vmem [resolvable:$true] %s1831_s29 }
 0x3e1   : > { %1554 = vrot.lane.b32.xlu1 %v2418_v15, %s2089_s13  ;;  %s2020_s9 = scalar_lea.vmem %s2532_s29, 256  ;;  %p2027_p0 = scmp.lt.s32.totalorder %s2532_s29, %s2025_s12 }
 0x3e2   : > { %1552 = vrot.lane.b32.xlu0 %v2424_v16, %s2089_s13  ;;  %s1938_s13 = sshll.u32 %s2137_s19, 8  ;;  %s1817_s19 = scalar_lea.sflag [#allocation3], %s188_s7 }
 0x3e3   : > { %s2530_s8 = scalar_lea.hbm %s2576_s4, %s1938_s13  ;;  %p2021_p11 = scmp.ne.s32.totalorder %s2532_s29, %s2020_s9 }
 0x3e4   : > { %p2028_p1 = scmp.lt.s32.totalorder %s2026_s14, %s2020_s9 }
 0x3e5   : > { %p2022_p12 = pnand %p2021_p11, %p2154_p5 }
 0x3e6   : > { %p2029_p2 = por %p2028_p1, %p2027_p0 }
 0x3e7   : > { %p2023_p13 = pneg %p2022_p12 }
 0x3e9   : > { %p2030_p3 = pnand %p2029_p2, %p2023_p13 }
 0x43f   : > { %v1054_v4 = vpop.permute.xlu1 %1053 }
 0x440   : > { %v1052_v30 = vpop.permute.xlu0 %1051 }
 0x441   : > { %v1055_v7 = vsel %vm273_vm11, %v1052_v30, %v1054_v4  ;;  %v1056_v29 = vsel %vm273_vm11, %v1054_v4, %v1052_v30 }
 0x443   : > { %v1060_v5 = vpop.permute.xlu1 %1059 }
 0x444   : > { %v1058_v6 = vpop.permute.xlu0 %1057 }
 0x445   : > { %v1061_v8 = vsel %vm280_vm12, %v1058_v6, %v1060_v5  ;;  %v1062_v9 = vsel %vm280_vm12, %v1060_v5, %v1058_v6 }
 0x446   : > { %v1064_v11 = vsel %vm2268_vm13, %v1062_v9, %v1055_v7  ;;  %v1063_v12 = vsel %vm2272_vm14, %v1061_v8, %v1056_v29  ;;  %v1066_v18 = vsel %vm2276_vm15, %v1055_v7, %v1062_v9  ;;  %v1065_v19 = vsel %vm2295_vm0, %v1056_v29, %v1061_v8 }
 0x447   : > { %1147 = vmatprep.subr.mxu1 %v1064_v11  ;;  %v1299_v14 = vpop.permute.xlu1 %1298 }
 0x448   : > { %v1297_v17 = vpop.permute.xlu0 %1296  ;;  %1148 = vmatpush1.msra.mxu1 %v1063_v12 }
 0x449   : > { %1917 = vmatmul.mubr.msk.f32.vlgmr.msra.gmra.mrb[0].mxu1 %vm290_vm5, %v1067_v13  ;;  %1223 = vmatprep.subr.mxu1 %v1066_v18  ;;  %v1300_v22 = vsel %vm273_vm11, %v1297_v17, %v1299_v14  ;;  %v1301_v27 = vsel %vm273_vm11, %v1299_v14, %v1297_v17 }
 0x44a   : > { %1224 = vmatpush1.msra.mxu1 %v1065_v19  ;;  %1287 = vmatprep.mubr.f32.mxu1 %v2086_v2 }
 0x44b   : > { %v1305_v20 = vpop.permute.xlu1 %1304 }
 0x44c   : > { %v1303_v21 = vpop.permute.xlu0 %1302 }
 0x44d   : > { %v1307_v23 = vsel %vm280_vm12, %v1305_v20, %v1303_v21  ;;  %v1306_v24 = vsel %vm280_vm12, %v1303_v21, %v1305_v20 }
 0x44e   : > { %v1309_v25 = vsel %vm2268_vm13, %v1307_v23, %v1300_v22  ;;  %v1308_v28 = vsel %vm2272_vm14, %v1306_v24, %v1301_v27  ;;  %v1311_v34 = vsel %vm2276_vm15, %v1300_v22, %v1307_v23  ;;  %v1310_v40 = vsel %vm2295_vm0, %v1301_v27, %v1306_v24 }
 0x44f   : > { %1317 = vmatprep.subr.mxu1 %v1309_v25  ;;  %v1549_v31 = vpop.permute.xlu1 %1548 }
 0x450   : > { %v1547_v32 = vpop.permute.xlu0 %1546 }
 0x451   : > { %1919 = vmatmul.mubr.msk.f32.vlgmr.msra.gmra.mrb[0].mxu1 %vm290_vm5, %v1918_v26  ;;  %v1550_v39 = vsel %vm273_vm11, %v1547_v32, %v1549_v31  ;;  %v1551_v47 = vsel %vm273_vm11, %v1549_v31, %v1547_v32 }
 0x452   : > { %1318 = vmatpush1.msra.mxu1 %v1308_v28  ;;  %1381 = vmatprep.mubr.f32.mxu1 %v2086_v2 }
 0x453   : > { %1395 = vmatprep.subr.mxu1 %v2375_v51  ;;  %v1555_v35 = vpop.permute.xlu1 %1554 }
 0x454   : > { %v1553_v36 = vpop.permute.xlu0 %1552 }
 0x455   : > { %v1557_v38 = vsel %vm280_vm12, %v1555_v35, %v1553_v36  ;;  %v1556_v44 = vsel %vm280_vm12, %v1553_v36, %v1555_v35 }
 0x456   : > { %v1559_v41 = vsel %vm2268_vm13, %v1557_v38, %v1550_v39  ;;  %v1558_v48 = vsel %vm2272_vm14, %v1556_v44, %v1551_v47  ;;  %v1561_v10 = vsel %vm2276_vm15, %v1550_v39, %v1557_v38  ;;  %v1560_v49 = vsel %vm2295_vm0, %v1551_v47, %v1556_v44 }
 0x459   : > { %1921 = vmatmul.mubr.msk.f32.vlgmr.msra.gmra.mrb[0].mxu1 %vm290_vm5, %v1920_v33 }
 0x45a   : > { %1396 = vmatpush1.msra.mxu1 %v2377_v52  ;;  %1459 = vmatprep.mubr.f32.mxu1 %v2086_v2 }
 0x45b   : > { %1473 = vmatprep.subr.mxu1 %v1311_v34 }
 0x461   : > { %1923 = vmatmul.mubr.msk.f32.vlgmr.msra.gmra.mrb[0].mxu1 %vm290_vm5, %v1922_v37 }
 0x462   : > { %1474 = vmatpush1.msra.mxu1 %v1310_v40  ;;  %1537 = vmatprep.mubr.f32.mxu1 %v2086_v2 }
 0x463   : > { %1567 = vmatprep.subr.mxu1 %v1559_v41 }
 0x469   : > { %1925 = vmatmul.mubr.msk.f32.vlgmr.msra.gmra.mrb[0].mxu1 %vm290_vm5, %v1924_v45 }
 0x46a   : > { %1568 = vmatpush1.msra.mxu1 %v1558_v48  ;;  %1631 = vmatprep.mubr.f32.mxu1 %v2086_v2 }
 0x46b   : > { %1645 = vmatprep.subr.mxu1 %v2418_v15 }
 0x471   : > { %1927 = vmatmul.mubr.msk.f32.vlgmr.msra.gmra.mrb[0].mxu1 %vm290_vm5, %v1926_v42 }
 0x472   : > { %1646 = vmatpush1.msra.mxu1 %v2424_v16  ;;  %1709 = vmatprep.mubr.f32.mxu1 %v2086_v2 }
 0x473   : > { %1723 = vmatprep.subr.mxu1 %v1561_v10 }
 0x479   : > { %1929 = vmatmul.mubr.msk.f32.vlgmr.msra.gmra.mrb[0].mxu1 %vm290_vm5, %v1928_v43 }
 0x47a   : > { %1724 = vmatpush1.msra.mxu1 %v1560_v49  ;;  %1787 = vmatprep.mubr.f32.mxu1 %v2086_v2 }
 0x481   : > { %1931 = vmatmul.mubr.msk.f32.vlgmr.msra.gmra.mrb[0].mxu1 %vm290_vm5, %v1930_v46 }
 0x554   : > { %v1789_v50 = vpop.f32.mrb[0].mxu1 }
 0x555   : > { %v1791_v51 = vpop.f32.mrb[1].mxu1 }
 0x556   : > { %v1796_v52 = vadd.f32 %v1791_v51, %v1789_v50 }
 0x558   : > { %1797 = vadd.xlane.f32.xlu0 %v1796_v52 }
 0x5e5   : > { %v1798_v53 = vpop.xlane.xlu0 %1797 }
 0x5e6   : > { %v1799_v55 = vmul.f32 0.00390625, %v1798_v53 }
 0x5e8   : > { %v1800_v56 = vsub.f32 %v1789_v50, %v1799_v55  ;;  %v1801_v54 = vsub.f32 %v1791_v51, %v1799_v55 }
 0x5ea   : > { %v1802_v57 = vmul.f32 %v1800_v56, %v1800_v56  ;;  %v1803_v58 = vmul.f32 %v1801_v54, %v1801_v54 }
 0x5ec   : > { %v1804_v59 = vadd.f32 %v1803_v58, %v1802_v57 }
 0x5ee   : > { %1805 = vadd.xlane.f32.xlu1 %v1804_v59 }
 0x67b   : > { %v1806_v2 = vpop.xlane.xlu1 %1805 }
 0x67c   : > { %v1807_v60 = vmul.f32 0.00390625, %v1806_v2 }
 0x67e   : > { %v1808_v61 = vadd.f32 1e-05, %v1807_v60 }
 0x680   : > { %2018 = vrsqrt.f32 %v1808_v61 }
 0x68a   : > { %v2019_v62 = vpop.eup %2018 }
 0x68b   : > { %v1810_v63 = vmul.f32 %v2019_v62, %v1800_v56  ;;  %v1811_v3 = vmul.f32 %v2019_v62, %v1801_v54 }
 0x68d   : > { %v1812_v15 = vadd.f32 %v1810_v63, %v2169_v0  ;;  %v1813_v16 = vadd.f32 %v1811_v3, %v2175_v1 }
 0x68f   : > { %1814 = vst [vmem:[%s190_s28] sm:$0xff] %v1812_v15  ;;  %1815 = vst [vmem:[%s190_s28 + $0x8] sm:$0xff] %v1813_v16 }
 0x690   : > { %2033 = shalt.err (!%p2030_p3)
}
 0x691   : > { %s2034_s20 = scalar_lea.hbm %s2530_s8, 256  ;;  %s2038_s27 = scalar_lea.hbm %s2576_s4, 512 }
 0x692   : > { %p2035_p4 = scmp.ne.s32.totalorder %s2530_s8, %s2034_s20  ;;  %p2039_p9 = scmp.lt.u32.totalorder %s2530_s8, %s2576_s4 }
 0x693   : > { %p2040_p10 = scmp.lt.u32.totalorder %s2038_s27, %s2034_s20  ;;  %p2042_p12 = scmp.lt.u32.totalorder %s2034_s20, %s2530_s8 }
 0x694   : > { %p2036_p7 = pnand %p2035_p4, %p2154_p5 }
 0x695   : > { %p2041_p11 = por %p2040_p10, %p2039_p9 }
 0x696   : > { %p2037_p8 = pneg %p2036_p7 }
 0x697   : > { %p2043_p13 = por %p2042_p12, %p2041_p11 }
 0x699   : > { %p2044_p0 = pnand %p2043_p13, %p2037_p8 }
 0x69b   : > { %2047 = shalt.err (!%p2044_p0)
}
 0x69c   : > { %1971 = dma.vmem_to_hbm [thread:$0]  (%p2154_p5), %s2532_s29, 256, %s2530_s8, %s1817_s19  }
 0x69d PF: > { %p1977_p1 = scmp.ge.s32.totalorder %s2082_s18, 2  ;;  %s1843_s10 = sand.u32 1, %s2070_s15  }
 0x69e   : > { %s1844_s13 = scalar_lea.sflag [#allocation3], %s1843_s10 }
 0x69f   : > { %p1974_p2 = pnand %p1977_p1, %p2158_p6 }
 0x6a1   : > { %2065 = dma.done.wait (!%p1974_p2), %s1844_s13, 256  }
 0x6a2   : > { %2067 = vsyncadd (!%p1974_p2), %s1844_s13, 4294967040  ;;  %p14_p3 = scmp.ge.s32.totalorder %s2141_s21, 4   ;;  %s2595_s15 = smov %s2074_s16 }
 0x6a3   : > { %s2596_s16 = smov %s2078_s17  ;;  %s2597_s17 = smov %s2152_s24 }
 0x6a4   : > { %s2598_s18 = smov %s2141_s21  ;;  %16 = sbr.rel (!%p14_p3) target bundleno = 3 (0x3), region = 88 }
 0x6ab   :  { %1849 = vsyncpa [#allocation3], 1 }
 0x6ac   :  { %1851 = vsyncpa [#allocation3 + $0x1], 1 }

</bundles_post_ra>
